<compile_context>
chip_gen: v5e
topology: v5e:2x2
jax: 0.10.0
libtpu: 0.0.40
codegen_flags: <defaults>
</compile_context>

<pallas_src>
import functools

import jax
import jax.numpy as jnp
from jax import lax
from jax.experimental import pallas as pl
from jax.experimental.pallas import tpu as pltpu

LEAKY_SLOPE = 0.1
BN_EPS = 1e-5
HEDIS_THETA = 0.3


def _leaky(y):
    return jnp.where(y > 0, y, LEAKY_SLOPE * y)


def _row_tile(n, cap=512):
    """Largest tile <= cap that divides n (all candidates are multiples of 8)."""
    for t in (512, 256, 128, 64, 32, 16, 8):
        if t <= cap and t <= n and n % t == 0:
            return t
    return n


# ---------------------------------------------------------------------------
# Pallas kernels
# ---------------------------------------------------------------------------
def _conv1x1_kernel(x_ref, w_ref, b_ref, o_ref):
    """1x1 conv with BN scale pre-folded into w; adds bias, LeakyReLU."""
    y = jnp.dot(x_ref[...], w_ref[...], preferred_element_type=jnp.float32)
    y = y + b_ref[...]
    o_ref[...] = _leaky(y).astype(o_ref.dtype)


def _gate_hedis_kernel(c_ref, xd_ref, xm_ref, x_ref, wxd_ref, bxd_ref, wa_ref, ba_ref,
                       z_ref, a_ref, b_ref, *, chan, theta):
    """Fused conv*hd(c) -> a, conv*hd(xd) -> b, conv*hu(xd) -> hu, and hedis gating.

    The dsm path does ONE matmul against [w_hu | w_hd] and splits hu / b in-kernel,
    so the Cout=1 matvec never runs alone and a/b/hu never hit HBM before hedis.
    """
    # dsm path: (TM, Ch) @ (Ch, C+1) -> columns [0:C] = hu, column [C] = b logits.
    y = jnp.dot(xd_ref[...], wxd_ref[...], preferred_element_type=jnp.float32)
    y = _leaky(y + bxd_ref[...])
    hu = y[:, :chan]                                  # (TM, C)
    b = jax.nn.sigmoid(y[:, chan:chan + 1])           # (TM, 1)

    # rgb-conv path: small matvec for a.
    a_pre = jnp.dot(c_ref[...], wa_ref[...], preferred_element_type=jnp.float32)
    a = jax.nn.sigmoid(_leaky(a_pre + ba_ref[...]))   # (TM, 1)

    xm = xm_ref[...]
    x = x_ref[...]
    m1 = jnp.where(a > theta, 1.0, 0.0)
    m2 = jnp.where(b > theta, 1.0, 0.0)
    m_mix = m1 * m2
    m_1 = m1 - m_mix
    m_2 = m2 - m_mix
    z = m_mix * (xm + x + hu) + m_1 * (xm + x) * a + m_2 * (xm + hu) * b

    z_ref[...] = z.astype(z_ref.dtype)
    a_ref[...] = a.astype(a_ref.dtype)
    b_ref[...] = b.astype(b_ref.dtype)


def _mullea_kernel(x0_ref, xcol_ref, xd_ref, wphi_ref, wth_ref, wg_ref, wmask_ref,
                   o_ref, theta_s, y_acc, *, tj):
    """Column-blocked MulLeaBlock forward for one batch element.

    Grid axis 1 blocks the key/column axis j; softmax is per-column (torch dim=1),
    so each column block is complete and y accumulates exactly over blocks.
    """
    j = pl.program_id(1)

    @pl.when(j == 0)
    def _():
        theta_s[...] = jnp.dot(xd_ref[...], wth_ref[...],
                               preferred_element_type=jnp.float32)       # (HW, Ci)
        y_acc[...] = jnp.zeros_like(y_acc)

    phi_j = jnp.dot(xcol_ref[...], wphi_ref[...],
                    preferred_element_type=jnp.float32)                  # (TJ, Ci)
    start = pl.multiple_of(j * tj, tj)
    x0_j = x0_ref[pl.ds(start, tj), :]                                   # (TJ, 2C)
    g_j = jnp.dot(x0_j, wg_ref[...], preferred_element_type=jnp.float32)  # (TJ, C)

    # s[i, jj] = theta[i, :] . phi_j[jj, :]
    s = lax.dot_general(theta_s[...], phi_j, (((1,), (1,)), ((), ())),
                        preferred_element_type=jnp.float32)              # (HW, TJ)
    # per-column softmax over i; normalize with reciprocal + multiply (no divides).
    e = jnp.exp(s - jnp.max(s, axis=0, keepdims=True))
    inv = pl.reciprocal(jnp.sum(e, axis=0, keepdims=True), approx=True)  # (1, TJ)
    y_acc[...] += jnp.dot(e * inv, g_j, preferred_element_type=jnp.float32)

    @pl.when(j == pl.num_programs(1) - 1)
    def _():
        mask = jnp.dot(y_acc[...], wmask_ref[...],
                       preferred_element_type=jnp.float32)               # (HW, 2C)
        o_ref[...] = (mask + x0_ref[...]).astype(o_ref.dtype)


# ---------------------------------------------------------------------------
# pallas_call wrappers
# ---------------------------------------------------------------------------
def conv1x1(x, w, scale, bias):
    """1x1 conv (no bias) + folded BN + LeakyReLU on (B, HW, Cin) -> (B, HW, Cout)."""
    B, HW, Cin = x.shape
    Cout = w.shape[1]
    w_f = w * scale                       # fold BN scale into the weight at trace time
    M = B * HW
    TM = _row_tile(M)
    out = pl.pallas_call(
        _conv1x1_kernel,
        out_shape=jax.ShapeDtypeStruct((M, Cout), x.dtype),
        grid_spec=pltpu.PrefetchScalarGridSpec(
            num_scalar_prefetch=0,
            grid=(M // TM,),
            in_specs=[
                pl.BlockSpec((TM, Cin), lambda i: (i, 0)),
                pl.BlockSpec((Cin, Cout), lambda i: (0, 0)),
                pl.BlockSpec((1, Cout), lambda i: (0, 0)),
            ],
            out_specs=pl.BlockSpec((TM, Cout), lambda i: (i, 0)),
        ),
        compiler_params=pltpu.CompilerParams(dimension_semantics=("parallel",)),
    )(x.reshape(M, Cin), w_f, bias)
    return out.reshape(B, HW, Cout)


def gate_hedis(c, xd, x_mix, x, hd_p, hu_p):
    """Fused a/b/hu gating convs + hedis for one scale. Returns (z, a, b)."""
    B, HW, C = x_mix.shape
    Ch = c.shape[2]                                   # = C // 2
    w_hd, s_hd, b_hd = hd_p
    w_hu, s_hu, b_hu = hu_p
    w_xd = jnp.concatenate([w_hu * s_hu, w_hd * s_hd], axis=1)    # (Ch, C+1)
    b_xd = jnp.concatenate([b_hu, b_hd], axis=1)                  # (1, C+1)
    w_a = w_hd * s_hd                                             # (Ch, 1)

    M = B * HW
    TM = _row_tile(M)
    kern = functools.partial(_gate_hedis_kernel, chan=C, theta=HEDIS_THETA)
    z, a, bb = pl.pallas_call(
        kern,
        out_shape=(
            jax.ShapeDtypeStruct((M, C), x_mix.dtype),
            jax.ShapeDtypeStruct((M, 1), x_mix.dtype),
            jax.ShapeDtypeStruct((M, 1), x_mix.dtype),
        ),
        grid_spec=pltpu.PrefetchScalarGridSpec(
            num_scalar_prefetch=0,
            grid=(M // TM,),
            in_specs=[
                pl.BlockSpec((TM, Ch), lambda i: (i, 0)),      # c
                pl.BlockSpec((TM, Ch), lambda i: (i, 0)),      # xd
                pl.BlockSpec((TM, C), lambda i: (i, 0)),       # x_mix
                pl.BlockSpec((TM, C), lambda i: (i, 0)),       # x
                pl.BlockSpec((Ch, C + 1), lambda i: (0, 0)),   # [w_hu | w_hd]
                pl.BlockSpec((1, C + 1), lambda i: (0, 0)),    # [b_hu | b_hd]
                pl.BlockSpec((Ch, 1), lambda i: (0, 0)),       # w_hd (for a)
                pl.BlockSpec((1, 1), lambda i: (0, 0)),        # b_hd (for a)
            ],
            out_specs=[
                pl.BlockSpec((TM, C), lambda i: (i, 0)),
                pl.BlockSpec((TM, 1), lambda i: (i, 0)),
                pl.BlockSpec((TM, 1), lambda i: (i, 0)),
            ],
        ),
        compiler_params=pltpu.CompilerParams(dimension_semantics=("parallel",)),
    )(c.reshape(M, Ch), xd.reshape(M, Ch), x_mix.reshape(M, C), x.reshape(M, C),
      w_xd, b_xd, w_a, b_hd)
    return z.reshape(B, HW, C), a.reshape(B, HW, 1), bb.reshape(B, HW, 1)


def mullea(x0, x, xd, p, *, tj_cap=128):
    """MulLeaBlock with the attention blocked over key columns (never (hw,hw) whole)."""
    wphi, wth, wg, wmask = p
    B, HW, C2 = x0.shape
    C = x.shape[2]
    Ci = wphi.shape[1]
    TJ = _row_tile(HW, cap=tj_cap)
    kern = functools.partial(_mullea_kernel, tj=TJ)
    return pl.pallas_call(
        kern,
        out_shape=jax.ShapeDtypeStruct((B, HW, C2), x0.dtype),
        grid_spec=pltpu.PrefetchScalarGridSpec(
            num_scalar_prefetch=0,
            grid=(B, HW // TJ),
            in_specs=[
                pl.BlockSpec((None, HW, C2), lambda b, j: (b, 0, 0)),  # x0 (full)
                pl.BlockSpec((None, TJ, C), lambda b, j: (b, j, 0)),   # x column block
                pl.BlockSpec((None, HW, C), lambda b, j: (b, 0, 0)),   # xd (full)
                pl.BlockSpec((C, Ci), lambda b, j: (0, 0)),            # w_phi
                pl.BlockSpec((C, Ci), lambda b, j: (0, 0)),            # w_theta
                pl.BlockSpec((C2, C), lambda b, j: (0, 0)),            # w_g
                pl.BlockSpec((C, C2), lambda b, j: (0, 0)),            # w_mask
            ],
            out_specs=pl.BlockSpec((None, HW, C2), lambda b, j: (b, 0, 0)),
            scratch_shapes=[
                pltpu.VMEM((HW, Ci), jnp.float32),    # theta cache
                pltpu.VMEM((HW, C), jnp.float32),     # y accumulator
            ],
        ),
        compiler_params=pltpu.CompilerParams(
            dimension_semantics=("parallel", "arbitrary")),
    )(x0, x, xd, wphi, wth, wg, wmask)


# ---------------------------------------------------------------------------
# MuDet core forward (Pallas) — backbone features are inputs, Neck/Head omitted
# ---------------------------------------------------------------------------
def mudet_forward_pallas(params, feats):
    x8, x16, x32, x8d, x16d, x32d = feats
    c4 = conv1x1(x32, *params["conv4"])
    c3 = conv1x1(x16, *params["conv3"])
    c2 = conv1x1(x8, *params["conv2"])

    x32_mix = mullea(x32, c4, x32d, params["mulLea4"])
    x16_mix = mullea(x16, c3, x16d, params["mulLea3"])
    x8_mix = mullea(x8, c2, x8d, params["mulLea2"])

    z32, a32, b32 = gate_hedis(c4, x32d, x32_mix, x32, params["conv4hd"], params["conv4hu"])
    z16, a16, b16 = gate_hedis(c3, x16d, x16_mix, x16, params["conv3hd"], params["conv3hu"])
    z8, a8, b8 = gate_hedis(c2, x8d, x8_mix, x8, params["conv2hd"], params["conv2hu"])
    return z32, z16, z8, a32, a16, a8, b32, b16, b8


# ---------------------------------------------------------------------------
# Pure-JAX reference (same math, no Pallas) for verification
# ---------------------------------------------------------------------------
def _conv1x1_ref(x, w, scale, bias, act="leaky"):
    y = jnp.einsum("bpc,cd->bpd", x, w, precision=lax.Precision.HIGHEST)
    y = y * scale + bias
    y = jnp.where(y > 0, y, LEAKY_SLOPE * y)
    if act == "leaky_sigmoid":
        y = jax.nn.sigmoid(y)
    return y


def _mullea_ref(x0, x, xd, p):
    wphi, wth, wg, wmask = p
    hi = lax.Precision.HIGHEST
    phi = jnp.einsum("bpc,cd->bpd", x, wphi, precision=hi)
    theta = jnp.einsum("bpc,cd->bpd", xd, wth, precision=hi)
    g = jnp.einsum("bpc,cd->bpd", x0, wg, precision=hi)
    attn = jnp.einsum("bik,bjk->bij", theta, phi, precision=hi)
    attn = jax.nn.softmax(attn, axis=1)                 # torch softmax(dim=1)
    y = jnp.einsum("bij,bjc->bic", attn, g, precision=hi)
    mask = jnp.einsum("bpc,cd->bpd", y, wmask, precision=hi)
    return mask + x0


def _hedis_ref(a, bb, xm, x, xd):
    m1 = jnp.where(a > HEDIS_THETA, 1.0, 0.0)
    m2 = jnp.where(bb > HEDIS_THETA, 1.0, 0.0)
    m_mix = m1 * m2
    m_1 = m1 - m_mix
    m_2 = m2 - m_mix
    return m_mix * (xm + x + xd) + m_1 * (xm + x) * a + m_2 * (xm + xd) * bb


def mudet_forward_ref(params, feats):
    x8, x16, x32, x8d, x16d, x32d = feats
    c4 = _conv1x1_ref(x32, *params["conv4"])
    c3 = _conv1x1_ref(x16, *params["conv3"])
    c2 = _conv1x1_ref(x8, *params["conv2"])
    x32_mix = _mullea_ref(x32, c4, x32d, params["mulLea4"])
    x16_mix = _mullea_ref(x16, c3, x16d, params["mulLea3"])
    x8_mix = _mullea_ref(x8, c2, x8d, params["mulLea2"])
    a32 = _conv1x1_ref(c4, *params["conv4hd"], act="leaky_sigmoid")
    a16 = _conv1x1_ref(c3, *params["conv3hd"], act="leaky_sigmoid")
    a8 = _conv1x1_ref(c2, *params["conv2hd"], act="leaky_sigmoid")
    b32 = _conv1x1_ref(x32d, *params["conv4hd"], act="leaky_sigmoid")
    b16 = _conv1x1_ref(x16d, *params["conv3hd"], act="leaky_sigmoid")
    b8 = _conv1x1_ref(x8d, *params["conv2hd"], act="leaky_sigmoid")
    hu32 = _conv1x1_ref(x32d, *params["conv4hu"])
    hu16 = _conv1x1_ref(x16d, *params["conv3hu"])
    hu8 = _conv1x1_ref(x8d, *params["conv2hu"])
    z32 = _hedis_ref(a32, b32, x32_mix, x32, hu32)
    z16 = _hedis_ref(a16, b16, x16_mix, x16, hu16)
    z8 = _hedis_ref(a8, b8, x8_mix, x8, hu8)
    return z32, z16, z8, a32, a16, a8, b32, b16, b8


# ---------------------------------------------------------------------------
# Deterministic parameter init (matches torch normal_(0, 0.01) convs, unit BN)
# ---------------------------------------------------------------------------
def _conv_w(key, cin, cout):
    return 0.01 * jax.random.normal(key, (cin, cout), jnp.float32)


def _bn_fold(cout):
    gamma = jnp.ones((1, cout), jnp.float32)
    beta = jnp.zeros((1, cout), jnp.float32)
    mean = jnp.zeros((1, cout), jnp.float32)
    var = jnp.ones((1, cout), jnp.float32)
    scale = gamma / jnp.sqrt(var + BN_EPS)
    bias = beta - mean * scale
    return scale, bias


def make_params(key, C8, C16, C32):
    keys = iter(jax.random.split(key, 32))
    params = {}
    # Convolutional(conv 1x1 no bias + BN + leaky): (weight, bn_scale, bn_bias)
    for name, cin, cout in [
        ("conv2", C8, C8 // 2), ("conv3", C16, C16 // 2), ("conv4", C32, C32 // 2),
        ("conv2hd", C8 // 2, 1), ("conv3hd", C16 // 2, 1), ("conv4hd", C32 // 2, 1),
        ("conv2hu", C8 // 2, C8), ("conv3hu", C16 // 2, C16), ("conv4hu", C32 // 2, C32),
    ]:
        params[name] = (_conv_w(next(keys), cin, cout), *_bn_fold(cout))
    # MulLeaBlock(channel): wphi, wtheta, wg, wmask (all bias-free 1x1 convs)
    for name, ch in [("mulLea2", C8 // 2), ("mulLea3", C16 // 2), ("mulLea4", C32 // 2)]:
        params[name] = (
            _conv_w(next(keys), ch, ch // 2),        # conv_phi
            _conv_w(next(keys), ch, ch // 2),        # conv_theta
            _conv_w(next(keys), 2 * ch, ch),         # conv_g
            _conv_w(next(keys), ch, 2 * ch),         # conv_mask
        )
    return params


def nchw_to_kernel(x):
    b, c, h, w = x.shape
    return jnp.transpose(x, (0, 2, 3, 1)).reshape(b, h * w, c)


if __name__ == "__main__":
    key = jax.random.PRNGKey(0)
    B = 2
    # Scaled-down MuDet channel plan (torch: 256/512/1024 rgb, 128/256/512 dsm -> /8):
    C8, C16, C32 = 32, 64, 128
    D8, D16, D32 = C8 // 2, C16 // 2, C32 // 2
    H8, H16, H32 = 16, 8, 4  # strides 8/16/32 of a 128px input

    kf, kx = jax.random.split(key)
    params = make_params(kf, C8, C16, C32)

    ks = jax.random.split(kx, 6)
    # Backbone features in NCHW (what Darknet53 / ResNet would produce), then -> kernel layout.
    x_8 = jax.random.normal(ks[0], (B, C8, H8, H8), jnp.float32)
    x_16 = jax.random.normal(ks[1], (B, C16, H16, H16), jnp.float32)
    x_32 = jax.random.normal(ks[2], (B, C32, H32, H32), jnp.float32)
    x_8_dsm = jax.random.normal(ks[3], (B, D8, H8, H8), jnp.float32)
    x_16_dsm = jax.random.normal(ks[4], (B, D16, H16, H16), jnp.float32)
    x_32_dsm = jax.random.normal(ks[5], (B, D32, H32, H32), jnp.float32)

    feats = tuple(nchw_to_kernel(t) for t in (x_8, x_16, x_32, x_8_dsm, x_16_dsm, x_32_dsm))

    out_pallas = jax.block_until_ready(mudet_forward_pallas(params, feats))
    out_ref = jax.block_until_ready(mudet_forward_ref(params, feats))

    names = ["z32", "z16", "z8", "a32", "a16", "a8", "b32", "b16", "b8"]
    # 1e-3 tolerance is deliberate: the softmax denominator uses the EUP approximate
    # reciprocal; its effect on the residual-dominated outputs is << 1e-4.
    for name, got, want in zip(names, out_pallas, out_ref):
        assert got.shape == want.shape, (name, got.shape, want.shape)
        if not jnp.allclose(got, want, rtol=1e-3, atol=1e-3):
            raise AssertionError(
                f"{name} mismatch, max abs diff {float(jnp.max(jnp.abs(got - want)))}")

    print("KERNEL_OK")
</pallas_src>

<mosaic_0001>
module attributes {stable_mosaic.version = 11 : i64} {
  func.func @_conv1x1_kernel(%arg0: i32, %arg1: memref<32x128xf32, #tpu.memory_space<vmem>>, %arg2: memref<128x64xf32, #tpu.memory_space<vmem>>, %arg3: memref<1x64xf32, #tpu.memory_space<vmem>>, %arg4: memref<32x64xf32, #tpu.memory_space<vmem>>) attributes {dimension_semantics = [#tpu.dimension_semantics<parallel>], iteration_bounds = array<i64: 1>, scalar_prefetch = 0 : i64, scratch_operands = 0 : i64, tpu.core_type = #tpu.core_type<tc>, window_params = [{transform_indices = @transform_0, window_bounds = array<i64: 32, 128>}, {pipeline_mode = #tpu.pipeline_mode<synchronous>, transform_indices = @transform_1, window_bounds = array<i64: 128, 64>}, {pipeline_mode = #tpu.pipeline_mode<synchronous>, transform_indices = @transform_2, window_bounds = array<i64: 1, 64>}, {transform_indices = @transform_3, window_bounds = array<i64: 32, 64>}]} {
    %c0 = arith.constant 0 : index
    %c0_0 = arith.constant 0 : index
    %0 = vector.load %arg1[%c0, %c0_0] : memref<32x128xf32, #tpu.memory_space<vmem>>, vector<32x128xf32>
    %c0_1 = arith.constant 0 : index
    %c0_2 = arith.constant 0 : index
    %1 = vector.load %arg2[%c0_1, %c0_2] : memref<128x64xf32, #tpu.memory_space<vmem>>, vector<128x64xf32>
    %cst = arith.constant dense<0.000000e+00> : vector<32x64xf32>
    %2 = tpu.matmul %0, %1, %cst {dimension_numbers = #tpu.dot_dimension_numbers<[1], [0], [0], [1], [0, 0, 1, 1], [], []>} : vector<32x128xf32>, vector<128x64xf32>, vector<32x64xf32> -> vector<32x64xf32>
    %c0_3 = arith.constant 0 : index
    %c0_4 = arith.constant 0 : index
    %3 = vector.load %arg3[%c0_3, %c0_4] : memref<1x64xf32, #tpu.memory_space<vmem>>, vector<1x64xf32>
    %4 = vector.broadcast %3 : vector<1x64xf32> to vector<32x64xf32>
    %5 = arith.addf %2, %4 : vector<32x64xf32>
    %cst_5 = arith.constant 0.000000e+00 : f32
    %6 = vector.broadcast %cst_5 : f32 to vector<32x64xf32>
    %7 = arith.cmpf ogt, %5, %6 : vector<32x64xf32>
    %cst_6 = arith.constant 1.000000e-01 : f32
    %8 = vector.broadcast %cst_6 : f32 to vector<32x64xf32>
    %9 = arith.mulf %8, %5 : vector<32x64xf32>
    %10 = arith.select %7, %5, %9 : vector<32x64xi1>, vector<32x64xf32>
    %c0_7 = arith.constant 0 : index
    %c0_8 = arith.constant 0 : index
    %11 = vector.load %arg4[%c0_7, %c0_8] : memref<32x64xf32, #tpu.memory_space<vmem>>, vector<32x64xf32>
    tpu.vector_store %arg4[%c0_7, %c0_8], %10 {strides = array<i32>} : memref<32x64xf32, #tpu.memory_space<vmem>>, vector<32x64xf32>,
    return
  }
  func.func @transform_0(%arg0: i32) -> (i32, i32) {
    %c0_i32 = arith.constant 0 : i32
    %c0_i32_0 = arith.constant 0 : i32
    return %arg0, %c0_i32 : i32, i32
  }
  func.func @transform_1(%arg0: i32) -> (i32, i32) {
    %c0_i32 = arith.constant 0 : i32
    %c0_i32_0 = arith.constant 0 : i32
    %c0_i32_1 = arith.constant 0 : i32
    return %c0_i32, %c0_i32_0 : i32, i32
  }
  func.func @transform_2(%arg0: i32) -> (i32, i32) {
    %c0_i32 = arith.constant 0 : i32
    %c0_i32_0 = arith.constant 0 : i32
    %c0_i32_1 = arith.constant 0 : i32
    return %c0_i32, %c0_i32_0 : i32, i32
  }
  func.func @transform_3(%arg0: i32) -> (i32, i32) {
    %c0_i32 = arith.constant 0 : i32
    %c0_i32_0 = arith.constant 0 : i32
    return %arg0, %c0_i32 : i32, i32
  }
}

</mosaic_0001>

<bundles_post_ra>
// kernel: tpu_custom_call.1
= control target key start
LH: loop header
LB: loop body
LE: loop exit
PB: predicated region body
PF: predicated region fallthrough
CT: control target
= control target key end

     0   :  { %s274_s0 = inlined_call_operand.vmem [shape: f32[32,128], index: 0, kind: input, shape index: {}]   ;;  %s275_s1 = inlined_call_operand.vmem [shape: f32[128,64], index: 1, kind: input, shape index: {}]   ;;  %s276_s2 = inlined_call_operand.vmem [shape: f32[1,64], index: 2, kind: input, shape index: {}]   ;;  %s277_s3 = inlined_call_operand.hbm [shape: f32[32,64], index: 3, kind: output, shape index: {}]  }
   0x1   :  { %v34_v0 = vld [vmem:[%s275_s1 + $0x78] sm:$0xff]  ;;  %v33_v1 = vld [vmem:[%s275_s1 + $0x70] sm:$0xff]  ;;  %v32_v2 = vld [vmem:[%s275_s1 + $0x68] sm:$0xff] }
   0x2   :  { %104 = vmatpush.msra.mxu2 %v34_v0  ;;  %105 = vmatpush.msra.mxu3 %v34_v0  ;;  %v31_v3 = vld [vmem:[%s275_s1 + $0x60] sm:$0xff]  ;;  %v30_v4 = vld [vmem:[%s275_s1 + $0x58] sm:$0xff] }
   0x3   :  { %39 = vmatpush.msra.mxu0 %v34_v0  ;;  %103 = vmatpush.msra.mxu1 %v34_v0 }
   0x4   :  { %107 = vmatpush.msra.mxu2 %v33_v1  ;;  %108 = vmatpush.msra.mxu3 %v33_v1 }
   0x5   :  { %40 = vmatpush.msra.mxu0 %v33_v1  ;;  %106 = vmatpush.msra.mxu1 %v33_v1 }
   0x6   :  { %110 = vmatpush.msra.mxu2 %v32_v2  ;;  %111 = vmatpush.msra.mxu3 %v32_v2 }
   0x7   :  { %41 = vmatpush.msra.mxu0 %v32_v2  ;;  %109 = vmatpush.msra.mxu1 %v32_v2 }
   0x8   :  { %113 = vmatpush.msra.mxu2 %v31_v3  ;;  %114 = vmatpush.msra.mxu3 %v31_v3 }
   0x9   :  { %8 = vsyncpa [#allocation3], 0  ;;  %42 = vmatpush.msra.mxu0 %v31_v3  ;;  %112 = vmatpush.msra.mxu1 %v31_v3  ;;  %v29_v5 = vld [vmem:[%s275_s1 + $0x50] sm:$0xff]  ;;  %v28_v6 = vld [vmem:[%s275_s1 + $0x48] sm:$0xff]  ;;  %vm80_vm0 = vcmask 523264   ;;  %s182_s29 = smov 128  }
   0xa   :  { %116 = vmatpush.msra.mxu2 %v30_v4  ;;  %117 = vmatpush.msra.mxu3 %v30_v4  ;;  %v27_v7 = vld [vmem:[%s275_s1 + $0x40] sm:$0xff]  ;;  %v26_v8 = vld [vmem:[%s275_s1 + $0x38] sm:$0xff]  ;;  %v25_v9 = vld [vmem:[%s275_s1 + $0x30] sm:$0xff]  ;;  %s183_s30 = smov 8  }
   0xb   :  { %43 = vmatpush.msra.mxu0 %v30_v4  ;;  %115 = vmatpush.msra.mxu1 %v30_v4  ;;  %v24_v10 = vld [vmem:[%s275_s1 + $0x28] sm:$0xff]  ;;  %v23_v11 = vld [vmem:[%s275_s1 + $0x20] sm:$0xff]  ;;  %v22_v12 = vld [vmem:[%s275_s1 + $0x18] sm:$0xff] }
   0xc   :  { %119 = vmatpush.msra.mxu2 %v29_v5  ;;  %120 = vmatpush.msra.mxu3 %v29_v5  ;;  %v21_v13 = vld [vmem:[%s275_s1 + $0x10] sm:$0xff]  ;;  %v20_v14 = vld [vmem:[%s275_s1 + $0x8] sm:$0xff]  ;;  %v19_v15 = vld [vmem:[%s275_s1] sm:$0xff] }
   0xd   :  { %44 = vmatpush.msra.mxu0 %v29_v5  ;;  %118 = vmatpush.msra.mxu1 %v29_v5  ;;  %v17_v16 = vld [vmem:[%s274_s0 + $0x10] sm:$0xff]  ;;  %v18_v17 = vld [vmem:[%s274_s0 + $0x18] sm:$0xff]  ;;  %v15_v18 = vld [vmem:[%s274_s0] sm:$0xff] }
   0xe   :  { %122 = vmatpush.msra.mxu2 %v28_v6  ;;  %123 = vmatpush.msra.mxu3 %v28_v6  ;;  %v16_v19 = vld [vmem:[%s274_s0 + $0x8] sm:$0xff]  ;;  %v154_v20 = vld [vmem:[%s276_s2] ss:$0 sm:$0xff]  ;;  %s181_s0 = smov [#allocation2]   ;;  %s91_s2 = sshll.u32 %s277_s3, 4  ;;  %s92_s2 = int_to_ptr.hbm [resolvable:$true] %s91_s2 }
   0xf   :  { %45 = vmatpush.msra.mxu0 %v28_v6  ;;  %121 = vmatpush.msra.mxu1 %v28_v6  ;;  %s89_s26 = sshll.u32 %s181_s0, 4  ;;  %s90_s26 = int_to_ptr.vmem [resolvable:$true] %s89_s26 }
  0x10   :  { %125 = vmatpush.msra.mxu2 %v27_v7  ;;  %126 = vmatpush.msra.mxu3 %v27_v7 }
  0x11   :  { %46 = vmatpush.msra.mxu0 %v27_v7  ;;  %124 = vmatpush.msra.mxu1 %v27_v7 }
  0x12   :  { %128 = vmatpush.msra.mxu2 %v26_v8  ;;  %129 = vmatpush.msra.mxu3 %v26_v8 }
  0x13   :  { %47 = vmatpush.msra.mxu0 %v26_v8  ;;  %127 = vmatpush.msra.mxu1 %v26_v8 }
  0x14   :  { %131 = vmatpush.msra.mxu2 %v25_v9  ;;  %132 = vmatpush.msra.mxu3 %v25_v9 }
  0x15   :  { %48 = vmatpush.msra.mxu0 %v25_v9  ;;  %130 = vmatpush.msra.mxu1 %v25_v9 }
  0x16   :  { %134 = vmatpush.msra.mxu2 %v24_v10  ;;  %135 = vmatpush.msra.mxu3 %v24_v10 }
  0x17   :  { %49 = vmatpush.msra.mxu0 %v24_v10  ;;  %133 = vmatpush.msra.mxu1 %v24_v10 }
  0x18   :  { %137 = vmatpush.msra.mxu2 %v23_v11  ;;  %138 = vmatpush.msra.mxu3 %v23_v11 }
  0x19   :  { %50 = vmatpush.msra.mxu0 %v23_v11  ;;  %136 = vmatpush.msra.mxu1 %v23_v11 }
  0x1a   :  { %140 = vmatpush.msra.mxu2 %v22_v12  ;;  %141 = vmatpush.msra.mxu3 %v22_v12 }
  0x1b   :  { %51 = vmatpush.msra.mxu0 %v22_v12  ;;  %139 = vmatpush.msra.mxu1 %v22_v12 }
  0x1c   :  { %143 = vmatpush.msra.mxu2 %v21_v13  ;;  %144 = vmatpush.msra.mxu3 %v21_v13 }
  0x1d   :  { %52 = vmatpush.msra.mxu0 %v21_v13  ;;  %142 = vmatpush.msra.mxu1 %v21_v13 }
  0x1e   :  { %146 = vmatpush.msra.mxu2 %v20_v14  ;;  %147 = vmatpush.msra.mxu3 %v20_v14 }
  0x1f   :  { %53 = vmatpush.msra.mxu0 %v20_v14  ;;  %145 = vmatpush.msra.mxu1 %v20_v14 }
  0x20   :  { %149 = vmatpush.msra.mxu2 %v19_v15  ;;  %150 = vmatpush.msra.mxu3 %v19_v15 }
  0x21   :  { %61 = vmatmul.f32.vlgmr.msra.gmra.mxu2 %v17_v16  ;;  %64 = vmatmul.f32.vlgmr.msra.gmra.mxu3 %v18_v17 }
  0x22   :  { %54 = vmatpush.msra.mxu0 %v19_v15  ;;  %148 = vmatpush.msra.mxu1 %v19_v15 }
  0x23   :  { %55 = vmatmul.f32.vlgmr.msra.gmra.mxu0 %v15_v18  ;;  %58 = vmatmul.f32.vlgmr.msra.gmra.mxu1 %v16_v19 }
  0xa0   :  { %v56_v21 = vpop.f32.mrf.mxu0  ;;  %v59_v22 = vpop.f32.mrf.mxu1 }
  0xa1   :  { %v57_v23 = vadd.f32 %v154_v20, %v56_v21  ;;  %v60_v24 = vadd.f32 %v154_v20, %v59_v22 }
  0xa3   :  { %vm68_vm1 = vcmp.gt.f32.partialorder %v57_v23, 0.0  ;;  %v72_v25 = vmul.f32 0.1, %v57_v23  ;;  %vm69_vm2 = vcmp.gt.f32.partialorder %v60_v24, 0.0  ;;  %v73_v26 = vmul.f32 0.1, %v60_v24 }
  0xa4   :  { %v62_v27 = vpop.f32.mrf.mxu2  ;;  %v65_v28 = vpop.f32.mrf.mxu3 }
  0xa5   :  { %v76_v29 = vsel %vm68_vm1, %v57_v23, %v72_v25  ;;  %v77_v30 = vsel %vm69_vm2, %v60_v24, %v73_v26  ;;  %v63_v31 = vadd.f32 %v154_v20, %v62_v27  ;;  %v66_v32 = vadd.f32 %v154_v20, %v65_v28 }
  0xa6   :  { %81 = vst.msk [vmem:[#allocation2] sm:$0xff] %vm80_vm0, %v76_v29 }
  0xa7   :  { %82 = vst.msk [vmem:[#allocation2 + $0x8] sm:$0xff] %vm80_vm0, %v77_v30  ;;  %vm70_vm3 = vcmp.gt.f32.partialorder %v63_v31, 0.0  ;;  %v74_v33 = vmul.f32 0.1, %v63_v31  ;;  %vm71_vm4 = vcmp.gt.f32.partialorder %v66_v32, 0.0 }
  0xa8   :  { %v75_v34 = vmul.f32 0.1, %v66_v32 }
  0xa9   :  { %v78_v35 = vsel %vm70_vm3, %v63_v31, %v74_v33 }
  0xaa   :  { %83 = vst.msk [vmem:[#allocation2 + $0x10] sm:$0xff] %vm80_vm0, %v78_v35  ;;  %v79_v36 = vsel %vm71_vm4, %v66_v32, %v75_v34 }
  0xab   :  { %84 = vst.msk [vmem:[#allocation2 + $0x18] sm:$0xff] %vm80_vm0, %v79_v36 }
  0xac   :  { %97 = dma.vmem_to_hbm [thread:$0]  %s90_s26, 512, %s92_s2, [#allocation3], %s182_s29, %s182_s29, %s183_s30  }
  0xad   :  { %179 = dma.done.wait [#allocation3], 512  }
  0xae   :  { %180 = vsyncadd [#allocation3], 4294966784 }
  0xaf   :  { %102 = vsyncpa [#allocation3], 1 }

</bundles_post_ra>
